<compile_context>
chip_gen: v6e
topology: v6e:2x2x1
jax: 0.10.0
libtpu: 0.0.40
codegen_flags: <defaults>
</compile_context>

<pallas_src>
import functools

import numpy as np
import jax
import jax.numpy as jnp
from jax.experimental import pallas as pl
from jax.experimental.pallas import tpu as pltpu


# ----------------------------------------------------------------------------------
# Kernel 1: sparse Conv3d as a K-packed gathered-neighbor matmul.
#   grid = (nN, nKB): nN row tiles ("parallel"), nKB packed-offset groups ("arbitrary", reduction).
#   x_packed[g]  : (N, KB*Cin)  bf16  gathered neighbor features for offset group g
#   w_packed[g]  : (KB*Cin, Cout) bf16 conv weights for offset group g
#   outputs: conv_out (N, Cout) f32, per-tile partial sum / sum-of-squares for BatchNorm.
# ----------------------------------------------------------------------------------
def conv_kernel(x_ref, w_ref, conv_ref, sum_ref, sq_ref, acc_ref):
    k = pl.program_id(1)

    @pl.when(k == 0)
    def _():
        acc_ref[...] = jnp.zeros_like(acc_ref)

    acc_ref[...] += jnp.dot(x_ref[0], w_ref[0], preferred_element_type=jnp.float32)

    @pl.when(k == pl.num_programs(1) - 1)
    def _():
        acc = acc_ref[...]
        conv_ref[...] = acc
        sum_ref[...] = jnp.sum(acc, axis=0, keepdims=True)[None]          # (1, 1, Cout)
        sq_ref[...] = jnp.sum(acc * acc, axis=0, keepdims=True)[None]     # (1, 1, Cout)


# ----------------------------------------------------------------------------------
# Kernel 2: finalize BatchNorm (train-mode batch statistics, like nn.BatchNorm forward in
# training) from the per-tile partial sums, then affine + ReLU.  Tiled over N, "parallel".
# ----------------------------------------------------------------------------------
def bn_relu_kernel(conv_ref, sum_ref, sq_ref, gamma_ref, beta_ref, o_ref, *, inv_n, eps=1e-5):
    s1 = jnp.sum(sum_ref[...], axis=0)            # (1, Cout) total sum
    s2 = jnp.sum(sq_ref[...], axis=0)             # (1, Cout) total sum of squares
    mean = s1 * inv_n
    var = jnp.maximum(s2 * inv_n - mean * mean, 0.0)   # biased variance (PyTorch BN normalization)
    x = conv_ref[...]
    y = (x - mean) * jax.lax.rsqrt(var + eps) * gamma_ref[...] + beta_ref[...]
    o_ref[...] = jnp.maximum(y, 0.0).astype(o_ref.dtype)


def conv_bn_relu_pallas(x_packed, w_packed, gamma, beta, *, tn=128):
    nkb, N, kbc = x_packed.shape
    Cout = w_packed.shape[-1]
    if N % tn != 0:           # fallback: single tile (full-dim block is always legal)
        tn = N
    nN = N // tn

    conv_out, psum, psq = pl.pallas_call(
        conv_kernel,
        out_shape=(
            jax.ShapeDtypeStruct((N, Cout), jnp.float32),
            jax.ShapeDtypeStruct((nN, 1, Cout), jnp.float32),
            jax.ShapeDtypeStruct((nN, 1, Cout), jnp.float32),
        ),
        grid_spec=pltpu.PrefetchScalarGridSpec(
            num_scalar_prefetch=0,
            grid=(nN, nkb),
            in_specs=[
                pl.BlockSpec((1, tn, kbc), lambda i, k: (k, i, 0)),
                pl.BlockSpec((1, kbc, Cout), lambda i, k: (k, 0, 0)),
            ],
            out_specs=[
                pl.BlockSpec((tn, Cout), lambda i, k: (i, 0)),
                pl.BlockSpec((1, 1, Cout), lambda i, k: (i, 0, 0)),
                pl.BlockSpec((1, 1, Cout), lambda i, k: (i, 0, 0)),
            ],
            scratch_shapes=[pltpu.VMEM((tn, Cout), jnp.float32)],
        ),
        compiler_params=pltpu.CompilerParams(
            dimension_semantics=("parallel", "arbitrary"),
            vmem_limit_bytes=32 * 1024 * 1024,
        ),
    )(x_packed, w_packed)

    out = pl.pallas_call(
        functools.partial(bn_relu_kernel, inv_n=1.0 / N),
        out_shape=jax.ShapeDtypeStruct((N, Cout), jnp.float32),
        grid_spec=pltpu.PrefetchScalarGridSpec(
            num_scalar_prefetch=0,
            grid=(nN,),
            in_specs=[
                pl.BlockSpec((tn, Cout), lambda i: (i, 0)),
                pl.BlockSpec((nN, 1, Cout), lambda i: (0, 0, 0)),
                pl.BlockSpec((nN, 1, Cout), lambda i: (0, 0, 0)),
                pl.BlockSpec((1, Cout), lambda i: (0, 0)),
                pl.BlockSpec((1, Cout), lambda i: (0, 0)),
            ],
            out_specs=pl.BlockSpec((tn, Cout), lambda i: (i, 0)),
        ),
        compiler_params=pltpu.CompilerParams(
            dimension_semantics=("parallel",),
            vmem_limit_bytes=32 * 1024 * 1024,
        ),
    )(conv_out, psum, psq, gamma, beta)
    return out


# ----------------------------------------------------------------------------------
# Host-side glue: synthetic sparse tensor, kernel map (neighbor search), offset packing.
# ----------------------------------------------------------------------------------
def build_sparse_example(key, batch_size, pts_per_batch, grid, inc):
    rng = np.random.RandomState(0)
    coords_list, batch_list = [], []
    for b in range(batch_size):
        flat = rng.choice(grid ** 3, size=pts_per_batch, replace=False)
        xs, ys, zs = flat // (grid * grid), (flat // grid) % grid, flat % grid
        coords_list.append(np.stack([xs, ys, zs], axis=1))
        batch_list.append(np.full((pts_per_batch,), b))
    coords = np.concatenate(coords_list, 0).astype(np.int32)       # (N, 3)
    batch_idx = np.concatenate(batch_list, 0).astype(np.int32)     # (N,)
    feats = jax.random.normal(key, (coords.shape[0], inc), dtype=jnp.float32)
    return coords, batch_idx, feats


def build_kernel_map(coords, batch_idx, ks=3, dilation=1, pad_row=None):
    # TODO(synk): data-dependent hash-table neighbor search has no clean Pallas equivalent;
    # it is done host-side (torchsparse also builds kernel maps outside the conv GEMM).
    N = coords.shape[0]
    if pad_row is None:
        pad_row = N
    lut = {(int(b), int(c[0]), int(c[1]), int(c[2])): i
           for i, (c, b) in enumerate(zip(coords, batch_idx))}
    r = ks // 2
    offsets = [(dx, dy, dz) for dx in range(-r, r + 1)
               for dy in range(-r, r + 1) for dz in range(-r, r + 1)]
    K = len(offsets)
    nbr_idx = np.full((K, N), pad_row, dtype=np.int32)   # missing neighbors -> zero pad row
    for k, (dx, dy, dz) in enumerate(offsets):
        for i in range(N):
            q = (int(batch_idx[i]),
                 int(coords[i, 0]) + dx * dilation,
                 int(coords[i, 1]) + dy * dilation,
                 int(coords[i, 2]) + dz * dilation)
            j = lut.get(q, -1)
            if j >= 0:
                nbr_idx[k, i] = j
    return nbr_idx


def pack_kernel_offsets(nbr_idx, w_conv, kb, pad_row):
    """Pad K to a multiple of kb and pack kb offsets into the matmul contraction dim."""
    K, N = nbr_idx.shape
    Cin, Cout = w_conv.shape[1:]
    K_pad = int(pl.cdiv(K, kb)) * kb
    idx_pad = np.full((K_pad, N), pad_row, np.int32)
    idx_pad[:K] = nbr_idx
    w_pad = np.zeros((K_pad, Cin, Cout), np.float32)
    w_pad[:K] = np.asarray(w_conv)
    nkb = K_pad // kb
    idx_pack = idx_pad.reshape(nkb, kb, N).transpose(0, 2, 1)   # (nkb, N, kb)
    w_pack = w_pad.reshape(nkb, kb * Cin, Cout)                 # (nkb, kb*Cin, Cout)
    return idx_pack, w_pack


def init_params(key, inc, outc, ks=3):
    K = ks ** 3
    k1, k2, k3 = jax.random.split(key, 3)
    w_conv = jax.random.normal(k1, (K, inc, outc), jnp.float32) / np.sqrt(K * inc)
    gamma = 1.0 + 0.1 * jax.random.normal(k2, (1, outc), jnp.float32)
    beta = 0.1 * jax.random.normal(k3, (1, outc), jnp.float32)
    return w_conv, gamma, beta


def basic_conv_block_forward(feats, nbr_idx, params, *, kb=8, tn=128):
    w_conv, gamma, beta = params
    N, Cin = feats.shape

    idx_pack, w_pack = pack_kernel_offsets(nbr_idx, np.asarray(w_conv), kb, pad_row=N)

    # Zero pad row so missing neighbors gather zeros (replaces the mask tensor).
    feats_bf16 = feats.astype(jnp.bfloat16)
    feats_pad = jnp.concatenate([feats_bf16, jnp.zeros((1, Cin), jnp.bfloat16)], axis=0)

    # TODO(synk): gather stays on the XLA side; an in-kernel per-row DMA gather (scalar-prefetched
    # indices) would avoid materializing the K-duplicated input but is not implemented here.
    x_pack = jnp.take(feats_pad, jnp.asarray(idx_pack), axis=0)      # (nkb, N, kb, Cin)
    nkb = x_pack.shape[0]
    x_pack = x_pack.reshape(nkb, N, kb * Cin)                        # (nkb, N, kb*Cin) bf16

    w_pack_bf16 = jnp.asarray(w_pack, dtype=jnp.bfloat16)
    return conv_bn_relu_pallas(x_pack, w_pack_bf16, gamma, beta, tn=tn)


def reference_forward(feats, nbr_idx, w_conv, gamma, beta, eps=1e-5):
    """Pure-JAX reference (same bf16 operand cast as the kernel)."""
    N, Cin = feats.shape
    feats_pad = jnp.concatenate(
        [feats.astype(jnp.bfloat16), jnp.zeros((1, Cin), jnp.bfloat16)], axis=0)
    gathered = jnp.take(feats_pad, jnp.asarray(nbr_idx), axis=0)     # (K, N, Cin)
    conv = jnp.einsum("kni,kio->no", gathered, w_conv.astype(jnp.bfloat16),
                      preferred_element_type=jnp.float32)
    mean = jnp.mean(conv, axis=0, keepdims=True)
    var = jnp.mean((conv - mean) ** 2, axis=0, keepdims=True)
    y = (conv - mean) * jax.lax.rsqrt(var + eps) * gamma + beta
    return jnp.maximum(y, 0.0)


if __name__ == "__main__":
    key = jax.random.PRNGKey(0)
    k_feat, k_param = jax.random.split(key)

    inc, outc = 32, 64
    ks, dilation = 3, 1
    batch_size, pts_per_batch, grid = 2, 256, 12      # N = 512 sparse voxels
    KB, TN = 8, 128                                   # KB*Cin = 256-deep MXU contraction

    coords, batch_idx, feats = build_sparse_example(k_feat, batch_size, pts_per_batch, grid, inc)
    params = init_params(k_param, inc, outc, ks=ks)

    nbr_idx = build_kernel_map(coords, batch_idx, ks=ks, dilation=dilation,
                               pad_row=feats.shape[0])

    out = basic_conv_block_forward(feats, nbr_idx, params, kb=KB, tn=TN)
    out = jax.block_until_ready(out)

    ref = jax.block_until_ready(reference_forward(feats, nbr_idx, *params))

    assert out.shape == (feats.shape[0], outc), out.shape
    assert bool(jnp.all(jnp.isfinite(out)))
    assert bool(jnp.all(out >= 0.0))                   # final ReLU
    max_err = float(np.max(np.abs(np.asarray(out) - np.asarray(ref))))
    assert np.allclose(np.asarray(out), np.asarray(ref), rtol=3e-2, atol=3e-2), max_err
    print("KERNEL_OK")
</pallas_src>

<mosaic_0001>
module attributes {stable_mosaic.version = 11 : i64} {
  func.func @conv_kernel(%arg0: i32, %arg1: i32, %arg2: memref<1x128x256xbf16, #tpu.memory_space<vmem>>, %arg3: memref<1x256x64xbf16, #tpu.memory_space<vmem>>, %arg4: memref<128x64xf32, #tpu.memory_space<vmem>>, %arg5: memref<1x1x64xf32, #tpu.memory_space<vmem>>, %arg6: memref<1x1x64xf32, #tpu.memory_space<vmem>>, %arg7: memref<128x64xf32, #tpu.memory_space<vmem>>) attributes {dimension_semantics = [#tpu.dimension_semantics<parallel>, #tpu.dimension_semantics<arbitrary>], iteration_bounds = array<i64: 4, 4>, scalar_prefetch = 0 : i64, scratch_operands = 1 : i64, tpu.core_type = #tpu.core_type<tc>, window_params = [{transform_indices = @transform_0, window_bounds = array<i64: 1, 128, 256>}, {transform_indices = @transform_1, window_bounds = array<i64: 1, 256, 64>}, {transform_indices = @transform_2, window_bounds = array<i64: 128, 64>}, {transform_indices = @transform_3, window_bounds = array<i64: 1, 1, 64>}, {transform_indices = @transform_4, window_bounds = array<i64: 1, 1, 64>}]} {
    %c0_i32 = arith.constant 0 : i32
    %0 = arith.cmpi eq, %arg1, %c0_i32 : i32
    %1 = arith.extui %0 : i1 to i32
    %c0_i32_0 = arith.constant 0 : i32
    %2 = arith.cmpi ne, %1, %c0_i32_0 : i32
    scf.if %2 {
      %cst_11 = arith.constant 0.000000e+00 : f32
      %14 = vector.broadcast %cst_11 : f32 to vector<128x64xf32>
      %c0_12 = arith.constant 0 : index
      %c0_13 = arith.constant 0 : index
      %15 = vector.load %arg7[%c0_12, %c0_13] : memref<128x64xf32, #tpu.memory_space<vmem>>, vector<128x64xf32>
      tpu.vector_store %arg7[%c0_12, %c0_13], %14 {strides = array<i32>} : memref<128x64xf32, #tpu.memory_space<vmem>>, vector<128x64xf32>,
    } else {
    }
    %c0 = arith.constant 0 : index
    %c0_1 = arith.constant 0 : index
    %3 = vector.load %arg7[%c0, %c0_1] : memref<128x64xf32, #tpu.memory_space<vmem>>, vector<128x64xf32>
    %c0_2 = arith.constant 0 : index
    %c0_3 = arith.constant 0 : index
    %c0_4 = arith.constant 0 : index
    %4 = vector.load %arg2[%c0_2, %c0_3, %c0_4] : memref<1x128x256xbf16, #tpu.memory_space<vmem>>, vector<1x128x256xbf16>
    %5 = vector.shape_cast %4 : vector<1x128x256xbf16> to vector<128x256xbf16>
    %c0_5 = arith.constant 0 : index
    %c0_6 = arith.constant 0 : index
    %c0_7 = arith.constant 0 : index
    %6 = vector.load %arg3[%c0_5, %c0_6, %c0_7] : memref<1x256x64xbf16, #tpu.memory_space<vmem>>, vector<1x256x64xbf16>
    %7 = vector.shape_cast %6 : vector<1x256x64xbf16> to vector<256x64xbf16>
    %cst = arith.constant dense<0.000000e+00> : vector<128x64xf32>
    %8 = tpu.matmul %5, %7, %cst {dimension_numbers = #tpu.dot_dimension_numbers<[1], [0], [0], [1], [0, 0, 1, 1], [], []>} : vector<128x256xbf16>, vector<256x64xbf16>, vector<128x64xf32> -> vector<128x64xf32>
    %9 = arith.addf %3, %8 : vector<128x64xf32>
    %c0_8 = arith.constant 0 : index
    %c0_9 = arith.constant 0 : index
    %10 = vector.load %arg7[%c0_8, %c0_9] : memref<128x64xf32, #tpu.memory_space<vmem>>, vector<128x64xf32>
    tpu.vector_store %arg7[%c0_8, %c0_9], %9 {strides = array<i32>} : memref<128x64xf32, #tpu.memory_space<vmem>>, vector<128x64xf32>,
    %c3_i32 = arith.constant 3 : i32
    %11 = arith.cmpi eq, %arg1, %c3_i32 : i32
    %12 = arith.extui %11 : i1 to i32
    %c0_i32_10 = arith.constant 0 : i32
    %13 = arith.cmpi ne, %12, %c0_i32_10 : i32
    scf.if %13 {
      %c0_11 = arith.constant 0 : index
      %c0_12 = arith.constant 0 : index
      %14 = vector.load %arg7[%c0_11, %c0_12] : memref<128x64xf32, #tpu.memory_space<vmem>>, vector<128x64xf32>
      %c0_13 = arith.constant 0 : index
      %c0_14 = arith.constant 0 : index
      %15 = vector.load %arg4[%c0_13, %c0_14] : memref<128x64xf32, #tpu.memory_space<vmem>>, vector<128x64xf32>
      tpu.vector_store %arg4[%c0_13, %c0_14], %14 {strides = array<i32>} : memref<128x64xf32, #tpu.memory_space<vmem>>, vector<128x64xf32>,
      %cst_15 = arith.constant dense<0.000000e+00> : vector<64xf32>
      %16 = vector.multi_reduction <add>, %14, %cst_15 [0] : vector<128x64xf32> to vector<64xf32>
      %17 = vector.shape_cast %16 : vector<64xf32> to vector<1x64xf32>
      %18 = vector.shape_cast %17 : vector<1x64xf32> to vector<1x1x64xf32>
      %c0_16 = arith.constant 0 : index
      %c0_17 = arith.constant 0 : index
      %c0_18 = arith.constant 0 : index
      %19 = vector.load %arg5[%c0_16, %c0_17, %c0_18] : memref<1x1x64xf32, #tpu.memory_space<vmem>>, vector<1x1x64xf32>
      tpu.vector_store %arg5[%c0_16, %c0_17, %c0_18], %18 {strides = array<i32>} : memref<1x1x64xf32, #tpu.memory_space<vmem>>, vector<1x1x64xf32>,
      %20 = arith.mulf %14, %14 : vector<128x64xf32>
      %cst_19 = arith.constant dense<0.000000e+00> : vector<64xf32>
      %21 = vector.multi_reduction <add>, %20, %cst_19 [0] : vector<128x64xf32> to vector<64xf32>
      %22 = vector.shape_cast %21 : vector<64xf32> to vector<1x64xf32>
      %23 = vector.shape_cast %22 : vector<1x64xf32> to vector<1x1x64xf32>
      %c0_20 = arith.constant 0 : index
      %c0_21 = arith.constant 0 : index
      %c0_22 = arith.constant 0 : index
      %24 = vector.load %arg6[%c0_20, %c0_21, %c0_22] : memref<1x1x64xf32, #tpu.memory_space<vmem>>, vector<1x1x64xf32>
      tpu.vector_store %arg6[%c0_20, %c0_21, %c0_22], %23 {strides = array<i32>} : memref<1x1x64xf32, #tpu.memory_space<vmem>>, vector<1x1x64xf32>,
    } else {
    }
    return
  }
  func.func @transform_0(%arg0: i32, %arg1: i32) -> (i32, i32, i32) {
    %c0_i32 = arith.constant 0 : i32
    %c0_i32_0 = arith.constant 0 : i32
    return %arg1, %arg0, %c0_i32 : i32, i32, i32
  }
  func.func @transform_1(%arg0: i32, %arg1: i32) -> (i32, i32, i32) {
    %c0_i32 = arith.constant 0 : i32
    %c0_i32_0 = arith.constant 0 : i32
    %c0_i32_1 = arith.constant 0 : i32
    return %arg1, %c0_i32, %c0_i32_0 : i32, i32, i32
  }
  func.func @transform_2(%arg0: i32, %arg1: i32) -> (i32, i32) {
    %c0_i32 = arith.constant 0 : i32
    %c0_i32_0 = arith.constant 0 : i32
    return %arg0, %c0_i32 : i32, i32
  }
  func.func @transform_3(%arg0: i32, %arg1: i32) -> (i32, i32, i32) {
    %c0_i32 = arith.constant 0 : i32
    %c0_i32_0 = arith.constant 0 : i32
    %c0_i32_1 = arith.constant 0 : i32
    return %arg0, %c0_i32, %c0_i32_0 : i32, i32, i32
  }
  func.func @transform_4(%arg0: i32, %arg1: i32) -> (i32, i32, i32) {
    %c0_i32 = arith.constant 0 : i32
    %c0_i32_0 = arith.constant 0 : i32
    %c0_i32_1 = arith.constant 0 : i32
    return %arg0, %c0_i32, %c0_i32_0 : i32, i32, i32
  }
}

</mosaic_0001>

<bundles_post_ra>
// kernel: tpu_custom_call.1
= control target key start
LH: loop header
LB: loop body
LE: loop exit
PB: predicated region body
PF: predicated region fallthrough
CT: control target
= control target key end

     0   :  { %s1844_s0 = inlined_call_operand.hbm [shape: bf16[4,512,256], index: 0, kind: input, shape index: {}]   ;;  %s1845_s1 = inlined_call_operand.vmem [shape: bf16[4,256,64], index: 1, kind: input, shape index: {}]   ;;  %s1846_s2 = inlined_call_operand.vmem [shape: f32[512,64], index: 2, kind: output, shape index: {0}]   ;;  %s1847_s3 = inlined_call_operand.hbm [shape: f32[4,1,64], index: 3, kind: output, shape index: {1}]   ;;  %s1848_s4 = inlined_call_operand.hbm [shape: f32[4,1,64], index: 4, kind: output, shape index: {2}]  }
   0x1   :  { %1853 = sst [smem:[#allocation17_spill]] %s1848_s4 }
   0x2   :  { %10 = vsyncpa [#allocation4], 0 }
   0x3   :  { %12 = vsyncpa [#allocation4 + $0x1], 0 }
   0x4   :  { %13 = vsyncpa [#allocation5], 0 }
   0x5   :  { %15 = vsyncpa [#allocation5 + $0x1], 0 }
   0x6   :  { %16 = vsyncpa [#allocation8], 0 }
   0x7   :  { %18 = vsyncpa [#allocation8 + $0x1], 0  ;;  %s1477_s15 = smov 0   ;;  %s1479_s16 = smov 0  }
   0x8   :  { %s1481_s17 = smov 0   ;;  %s1483_s18 = smov 0  }
   0x9   :  { %s1485_s19 = smov 0   ;;  %s1487_s20 = smov 0  }
   0xa   :  { %s1489_s21 = smov 0   ;;  %s1491_s22 = smov 0  }
   0xb   :  { %s1493_s23 = smov 0   ;;  %s1495_s24 = smov 0  }
   0xc   :  { %s1497_s25 = smov 0  }
   0xd LB: > { %1854 = sst [smem:[#allocation12_spill]] %s1440_s24  ;;  %s981_s26 = sadd.s32 4294967295, %s1444_s25   ;;  %s1444_s25 = sphi %s1497_s25, %s24_s25   ;;  %s1440_s24 = sphi %s1495_s24, %s1869_s24   ;;  %s1436_s23 = sphi %s1493_s23, %s1877_s23   ;;  %s1432_s22 = sphi %s1491_s22, %s1867_s22   ;;  %s1428_s21 = sphi %s1489_s21, %s1876_s21   ;;  %s1424_s20 = sphi %s1487_s20, %s1875_s20   ;;  %s1420_s19 = sphi %s1485_s19, %s1874_s19   ;;  %s1416_s18 = sphi %s1483_s18, %s1873_s18   ;;  %s1412_s17 = sphi %s1481_s17, %s1872_s17   ;;  %s1408_s16 = sphi %s1479_s16, %s1871_s16   ;;  %s1404_s15 = sphi %s1477_s15, %s1870_s15  }
   0xe   : > { %s982_s27 = sadd.s32 4294967294, %s1444_s25   ;;  %s33_s28 = sadd.s32 1, %s1436_s23 }
   0xf   : > { %s36_s29 = sadd.s32 1, %s1440_s24  ;;  %p34_p0 = scmp.ge.s32.totalorder %s33_s28, 4 }
  0x10   : > { %s45_s30 = sadd.s32 1, %s1424_s20  ;;  %p52_p1 = scmp.ne.s32.totalorder %s1424_s20, %s1420_s19 }
  0x11   : > { %p53_p2 = scmp.eq.s32.totalorder %s1444_s25, 0  ;;  %s1879_s28 = smov (%p34_p0, %s33_s28), 0 }
  0x12   : > { %1855 = sst [smem:[#allocation13_spill]] %s1879_s28  ;;  %s1881_s29 = smov (!%p34_p0, %s36_s29), %s1440_s24 }
  0x13   : > { %s40_s5 = ssub.s32 %s1436_s23, %s1879_s28  ;;  %p1543_p3 = por %p53_p2, %p52_p1 }
  0x14   : > { %p38_p4 = scmp.ge.s32.totalorder %s1881_s29, 4  ;;  %p58_p5 = scmp.ne.s32.totalorder %s1420_s19, %s1416_s18 }
  0x15   : > { %p59_p6 = scmp.eq.s32.totalorder %s981_s26, 0  ;;  %s123_s7 = sadd.s32 1, %s1412_s17 }
  0x16   : > { %s1883_s29 = smov (%p38_p4, %s1881_s29), 0  ;;  %p133_p8 = scmp.ne.s32.totalorder %s1412_s17, %s1408_s16 }
  0x17   : > { %1857 = sst [smem:[#allocation14_spill]] %s1883_s29  ;;  %p1551_p7 = por %p59_p6, %p58_p5 }
  0x18   : > { %s41_s9 = ssub.s32 %s1440_s24, %s1883_s29  ;;  %p134_p9 = scmp.eq.s32.totalorder %s981_s26, 15 }
  0x19   : > { %s42_s10 = sor.u32 %s41_s9, %s40_s5  ;;  %p121_p10 = scmp.eq.s32.totalorder %s41_s9, 0 }
  0x1a   : > { %p43_p11 = scmp.eq.s32.totalorder %s42_s10, 0  ;;  %p1559_p12 = por %p134_p9, %p133_p8 }
  0x1b   : > { %s1564_s12 = scalar_select %p121_p10, %s1412_s17, %s123_s7  }
  0x1c   : > { %s1567_s13 = scalar_select %p43_p11, %s1424_s20, %s45_s30  }
  0x1d   : > { %1860 = sst [smem:[#allocation15_spill]] %s1564_s12  ;;  %p139_p13 = scmp.ne.s32.totalorder %s1408_s16, %s1404_s15 }
  0x1e   : > { %1861 = sst [smem:[#allocation16_spill]] %s1567_s13  ;;  %p140_p0 = scmp.eq.s32.totalorder %s982_s27, 15 }
  0x1f   : > { %p1133_p1 = scmp.lt.s32.totalorder %s1444_s25, 16  ;;  %s186_s18 = sand.u32 1, %s1424_s20  }
  0x20   : > { %p1572_p2 = por %p140_p0, %p139_p13  ;;  %s985_s26 = sshll.u32 %s186_s18, 7 }
  0x21   : > { %s1034_s5 = sshll.u32 %s1440_s24, 5  ;;  %s988_s9 = sshll.u32 %s1436_s23, 7 }
  0x22   : > { %s190_s10 = scalar_lea.vmem [#allocation3], %s985_s26  ;;  %s197_s28 = sadd.s32 %s1034_s5, %s988_s9 }
  0x23   : > { %s200_s29 = sshll.u32 %s190_s10, 4  ;;  %s989_s4 = sshll.u32 %s197_s28, 6  ;;  %s201_s29 = int_to_ptr.vmem [resolvable:$true] %s200_s29 }
  0x24   : > { %p1581_p4 = pnand %p1133_p1, %p1543_p3  ;;  %s199_s13 = scalar_lea.hbm %s1844_s0, %s989_s4 }
  0x25   : > { %s187_s12 = scalar_lea.sflag [#allocation4], %s186_s18  ;;  %s1279_s24 = scalar_lea.vmem %s201_s29, 2048 }
  0x26   : > { %p1268_p5 = pneg %p1581_p4  ;;  %p1280_p6 = scmp.ne.s32.totalorder %s201_s29, %s1279_s24 }
  0x27   : > { %s1446_s26 = smov [#allocation3]  }
  0x28   : > { %p1282_p8 = pnand %p1280_p6, %p1268_p5  ;;  %s1284_s5 = sshll.u32 %s1446_s26, 4  ;;  %s1285_s5 = int_to_ptr.vmem [resolvable:$false] %s1284_s5 }
  0x29   : > { %s1286_s28 = scalar_lea.vmem %s1285_s5, 4096  ;;  %p1287_p3 = scmp.lt.s32.totalorder %s201_s29, %s1285_s5 }
  0x2a   : > { %p1283_p9 = pneg %p1282_p8  ;;  %p1288_p10 = scmp.lt.s32.totalorder %s1286_s28, %s1279_s24 }
  0x2c   : > { %p1289_p11 = por %p1288_p10, %p1287_p3 }
  0x2e   : > { %p1290_p13 = pnand %p1289_p11, %p1283_p9 }
  0x30   : > { %1293 = shalt.err (!%p1290_p13)
}
  0x31   : > { %s1447_s6 = smov 128   ;;  %s1448_s4 = smov 8  }
  0x32   : > { %1125 = dma.hbm_to_vmem [thread:$0]  (!%p1581_p4), %s199_s13, 2048, %s201_s29, %s187_s12, %s1447_s6, %s1447_s6, %s1448_s4  }
  0x33   : > { %p990_p0 = scmp.ge.s32.totalorder %s1444_s25, 1  ;;  %p216_p1 = scmp.lt.s32.totalorder %s1444_s25, 17 }
  0x35   : > { %p217_p5 = pnand %p990_p0, %p216_p1 }
  0x36   : > { %s222_s18 = sand.u32 (!%p217_p5), 1, %s1420_s19  }
  0x37   : > { %220 = sbr.rel (%p217_p5) target bundleno = 436 (0x1b4), region = 28  ;;  %s991_s9 = sshll.u32 (!%p217_p5), %s222_s18, 7 }
  0x38   : > { %s223_s10 = scalar_lea.sflag (!%p217_p5), [#allocation4], %s222_s18  ;;  %s1595_s24 = scalar_lea.vmem (!%p217_p5), [#allocation3], %s991_s9 }
  0x3c   : > { %1391 = dma.done.wait (%p1551_p7), %s223_s10, 2048  }
  0x3d   : > { %1393 = vsyncadd (%p1551_p7), %s223_s10, 4294965248  ;;  %s1602_s29 = sand.u32 1, %s1408_s16   ;;  %p265_p4 = scmp.lt.s32.totalorder %s1428_s21, 3 }
  0x3e   : > { %s1607_s13 = sshll.u32 %s1432_s22, 4  ;;  %s257_s18 = scalar_lea.vmem [#allocation6], %s1602_s29 }
  0x3f   : > { %s266_s12 = scalar_select %p265_p4, %s1428_s21, 3 }
  0x40   : > { %p271_p6 = scmp.lt.s32.totalorder %s1607_s13, 63  ;;  %s263_s9 = scalar_lea.vmem [#allocation7], %s1602_s29 }
  0x41   : > { %s1035_s30 = sshll.u32 %s266_s12, 7  ;;  %p996_p7 = scmp.ne.s32.totalorder %s1428_s21, 0 }
  0x42   : > { %s1613_s8 = scalar_lea.vmem %s1845_s1, %s1035_s30 }
  0x43   : > { %s272_s26 = scalar_select %p271_p6, %s1607_s13, 63 }
  0x44   : > { %280 = sbr.rel (%p996_p7) target bundleno = 82 (0x52), region = 36 }
  0x45   : > { %s995_s5 = sshll.u32 %s272_s26, 3 }
  0x46   : > { %s1619_s4 = scalar_lea.vmem %s1846_s2, %s995_s5 }
  0x49   : > { %vm281_vm0 = vcmask 523264   ;;  %v1449_v0 = vmov 0.0  }
  0x4a   : > { %282 = vst.msk [vmem:[#allocation2] sm:$0xff] %vm281_vm0, %v1449_v0  ;;  %283 = vst.msk [vmem:[#allocation2 + $0x8] sm:$0xff] %vm281_vm0, %v1449_v0 }
  0x4b   : > { %284 = vst.msk [vmem:[#allocation2 + $0x10] sm:$0xff] %vm281_vm0, %v1449_v0  ;;  %285 = vst.msk [vmem:[#allocation2 + $0x18] sm:$0xff] %vm281_vm0, %v1449_v0 }
  0x4c   : > { %286 = vst.msk [vmem:[#allocation2 + $0x20] sm:$0xff] %vm281_vm0, %v1449_v0  ;;  %287 = vst.msk [vmem:[#allocation2 + $0x28] sm:$0xff] %vm281_vm0, %v1449_v0 }
  0x4d   : > { %288 = vst.msk [vmem:[#allocation2 + $0x30] sm:$0xff] %vm281_vm0, %v1449_v0  ;;  %289 = vst.msk [vmem:[#allocation2 + $0x38] sm:$0xff] %vm281_vm0, %v1449_v0 }
  0x4e   : > { %290 = vst.msk [vmem:[#allocation2 + $0x40] sm:$0xff] %vm281_vm0, %v1449_v0  ;;  %291 = vst.msk [vmem:[#allocation2 + $0x48] sm:$0xff] %vm281_vm0, %v1449_v0 }
  0x4f   : > { %292 = vst.msk [vmem:[#allocation2 + $0x50] sm:$0xff] %vm281_vm0, %v1449_v0  ;;  %293 = vst.msk [vmem:[#allocation2 + $0x58] sm:$0xff] %vm281_vm0, %v1449_v0 }
  0x50   : > { %294 = vst.msk [vmem:[#allocation2 + $0x60] sm:$0xff] %vm281_vm0, %v1449_v0  ;;  %295 = vst.msk [vmem:[#allocation2 + $0x68] sm:$0xff] %vm281_vm0, %v1449_v0 }
  0x51   : > { %296 = vst.msk [vmem:[#allocation2 + $0x70] sm:$0xff] %vm281_vm0, %v1449_v0  ;;  %297 = vst.msk [vmem:[#allocation2 + $0x78] sm:$0xff] %vm281_vm0, %v1449_v0 }
  0x52 PF: > { %v1226_v1 = vld [vmem:[%s1613_s8 + $0x78] sm:$0xff]   ;;  %v1228_v3 = vld [vmem:[%s1613_s8 + $0x70] sm:$0xff]   ;;  %v1230_v5 = vld [vmem:[%s1613_s8 + $0x68] sm:$0xff]   ;;  %vm651_vm1 = vcmask 523264   ;;  %p1029_p8 = scmp.ne.s32.totalorder %s1428_s21, 3 }
  0x53   : > { %v1227_v2 = vld [vmem:[%s1613_s8 + $0x38] sm:$0xff]   ;;  %1036 = vmatprep.subr.bf16.mxu0 %v1226_v1  ;;  %1100 = vmatprep.subr.bf16.mxu1 %v1226_v1  ;;  %v1229_v4 = vld [vmem:[%s1613_s8 + $0x30] sm:$0xff]   ;;  %v1231_v6 = vld [vmem:[%s1613_s8 + $0x28] sm:$0xff]  }
  0x54   : > { %1037 = vmatpush3.bf16.msra.mxu0 %v1227_v2  ;;  %1108 = vmatpush3.bf16.msra.mxu1 %v1227_v2  ;;  %v1232_v7 = vld [vmem:[%s1613_s8 + $0x60] sm:$0xff]   ;;  %v1234_v9 = vld [vmem:[%s1613_s8 + $0x58] sm:$0xff]   ;;  %v1236_v11 = vld [vmem:[%s1613_s8 + $0x50] sm:$0xff]  }
  0x55   : > { %1038 = vmatprep.subr.bf16.mxu0 %v1228_v3  ;;  %1101 = vmatprep.subr.bf16.mxu1 %v1228_v3  ;;  %v1233_v8 = vld [vmem:[%s1613_s8 + $0x20] sm:$0xff]   ;;  %v1235_v10 = vld [vmem:[%s1613_s8 + $0x18] sm:$0xff]   ;;  %v1237_v14 = vld [vmem:[%s1613_s8 + $0x10] sm:$0xff]  }
  0x56   : > { %v1244_v12 = vld [vmem:[%s1595_s24 + $0x4] ss:$8 sps:$4 sm:$0xff]   ;;  %v1242_v19 = vld [vmem:[%s1595_s24] ss:$8 sps:$4 sm:$0xff]   ;;  %v1248_v21 = vld [vmem:[%s1595_s24 + $0x14] ss:$8 sps:$4 sm:$0xff]  }
  0x57   : > { %v1247_v13 = vld [vmem:[%s1595_s24 + $0x44] ss:$8 sps:$4 sm:$0xff]   ;;  %570 = vmatprep.mubr.bf16.mxu0 %v1244_v12  ;;  %v1245_v20 = vld [vmem:[%s1595_s24 + $0x40] ss:$8 sps:$4 sm:$0xff]   ;;  %v1250_v22 = vld [vmem:[%s1595_s24 + $0x54] ss:$8 sps:$4 sm:$0xff]  }
  0x58   : > { %1039 = vmatpush3.bf16.msra.mxu0 %v1229_v4  ;;  %1109 = vmatpush3.bf16.msra.mxu1 %v1229_v4  ;;  %v1238_v15 = vld [vmem:[%s1613_s8 + $0x48] sm:$0xff]   ;;  %v1240_v17 = vld [vmem:[%s1613_s8 + $0x40] sm:$0xff]   ;;  %v1252_v23 = vld [vmem:[%s1595_s24 + $0x10] ss:$8 sps:$4 sm:$0xff]  }
  0x59   : > { %1040 = vmatprep.subr.bf16.mxu0 %v1230_v5  ;;  %1102 = vmatprep.subr.bf16.mxu1 %v1230_v5  ;;  %v1239_v16 = vld [vmem:[%s1613_s8 + $0x8] sm:$0xff]   ;;  %v1241_v18 = vld [vmem:[%s1613_s8] sm:$0xff]   ;;  %v1253_v24 = vld [vmem:[%s1595_s24 + $0x50] ss:$8 sps:$4 sm:$0xff]  }
  0x5a   : > { %602 = vmatprep.mubr.bf16.mxu1 %v1247_v13  ;;  %v1254_v25 = vld [vmem:[%s1595_s24 + $0x24] ss:$8 sps:$4 sm:$0xff]   ;;  %v1258_v27 = vld [vmem:[%s1595_s24 + $0x20] ss:$8 sps:$4 sm:$0xff]   ;;  %v1260_v29 = vld [vmem:[%s1595_s24 + $0x34] ss:$8 sps:$4 sm:$0xff]  }
  0x5b   : > { %v1256_v26 = vld [vmem:[%s1595_s24 + $0x64] ss:$8 sps:$4 sm:$0xff]   ;;  %v1259_v28 = vld [vmem:[%s1595_s24 + $0x60] ss:$8 sps:$4 sm:$0xff]   ;;  %v1262_v30 = vld [vmem:[%s1595_s24 + $0x74] ss:$8 sps:$4 sm:$0xff]  }
  0x5c   : > { %1041 = vmatpush3.bf16.msra.mxu0 %v1231_v6  ;;  %1110 = vmatpush3.bf16.msra.mxu1 %v1231_v6  ;;  %v1264_v31 = vld [vmem:[%s1595_s24 + $0x30] ss:$8 sps:$4 sm:$0xff]   ;;  %v298_v35 = vld [vmem:[#allocation2] sm:$0xff]  ;;  %v299_v45 = vld [vmem:[#allocation2 + $0x8] sm:$0xff] }
  0x5d   : > { %1042 = vmatprep.subr.bf16.mxu0 %v1232_v7  ;;  %1103 = vmatprep.subr.bf16.mxu1 %v1232_v7  ;;  %v1265_v32 = vld [vmem:[%s1595_s24 + $0x70] ss:$8 sps:$4 sm:$0xff]   ;;  %v306_v37 = vld [vmem:[#allocation2 + $0x40] sm:$0xff]  ;;  %v307_v47 = vld [vmem:[#allocation2 + $0x48] sm:$0xff] }
  0x5e   : > { %v300_v55 = vld [vmem:[#allocation2 + $0x10] sm:$0xff]  ;;  %v301_v1 = vld [vmem:[#allocation2 + $0x18] sm:$0xff]  ;;  %v310_v13 = vld [vmem:[#allocation2 + $0x60] sm:$0xff] }
  0x5f   : > { %v308_v57 = vld [vmem:[#allocation2 + $0x50] sm:$0xff]  ;;  %v309_v3 = vld [vmem:[#allocation2 + $0x58] sm:$0xff] }
  0x60   : > { %1043 = vmatpush3.bf16.msra.mxu0 %v1233_v8  ;;  %1111 = vmatpush3.bf16.msra.mxu1 %v1233_v8 }
  0x61   : > { %1044 = vmatprep.subr.bf16.mxu0 %v1234_v9  ;;  %1104 = vmatprep.subr.bf16.mxu1 %v1234_v9 }
  0x64   : > { %1045 = vmatpush3.bf16.msra.mxu0 %v1235_v10  ;;  %1112 = vmatpush3.bf16.msra.mxu1 %v1235_v10 }
  0x65   : > { %1046 = vmatprep.subr.bf16.mxu0 %v1236_v11  ;;  %1105 = vmatprep.subr.bf16.mxu1 %v1236_v11  ;;  %v302_v11 = vld [vmem:[#allocation2 + $0x20] sm:$0xff] }
  0x68   : > { %1047 = vmatpush3.bf16.msra.mxu0 %v1237_v14  ;;  %1113 = vmatpush3.bf16.msra.mxu1 %v1237_v14 }
  0x69   : > { %1048 = vmatprep.subr.bf16.mxu0 %v1238_v15  ;;  %1106 = vmatprep.subr.bf16.mxu1 %v1238_v15 }
  0x6c   : > { %1049 = vmatpush3.bf16.msra.mxu0 %v1239_v16  ;;  %1114 = vmatpush3.bf16.msra.mxu1 %v1239_v16 }
  0x6d   : > { %1050 = vmatprep.subr.bf16.mxu0 %v1240_v17  ;;  %1107 = vmatprep.subr.bf16.mxu1 %v1240_v17 }
  0x70   : > { %1051 = vmatpush3.bf16.msra.mxu0 %v1241_v18  ;;  %1115 = vmatpush3.bf16.msra.mxu1 %v1241_v18 }
  0x73   : > { %571 = vmatmul.mubr.bf16.vlgmr.msra.gmra.mxu0 %v1242_v19  ;;  %603 = vmatmul.mubr.bf16.vlgmr.msra.gmra.mxu1 %v1245_v20 }
  0x74   : > { %578 = vmatprep.mubr.bf16.mxu0 %v1248_v21  ;;  %610 = vmatprep.mubr.bf16.mxu1 %v1250_v22  ;;  %v303_v21 = vld [vmem:[#allocation2 + $0x28] sm:$0xff] }
  0x7b   : > { %579 = vmatmul.mubr.bf16.gmra.mxu0 %v1252_v23  ;;  %611 = vmatmul.mubr.bf16.gmra.mxu1 %v1253_v24  ;;  %v311_v23 = vld [vmem:[#allocation2 + $0x68] sm:$0xff] }
  0x7c   : > { %586 = vmatprep.mubr.bf16.mxu0 %v1254_v25  ;;  %618 = vmatprep.mubr.bf16.mxu1 %v1256_v26 }
  0x83   : > { %587 = vmatmul.mubr.bf16.gmra.mxu0 %v1258_v27  ;;  %619 = vmatmul.mubr.bf16.gmra.mxu1 %v1259_v28 }
  0x84   : > { %594 = vmatprep.mubr.bf16.mxu0 %v1260_v29  ;;  %626 = vmatprep.mubr.bf16.mxu1 %v1262_v30 }
  0x8b   : > { %595 = vmatmul.mubr.bf16.gmra.mxu0 %v1264_v31  ;;  %627 = vmatmul.mubr.bf16.gmra.mxu1 %v1265_v32  ;;  %v304_v31 = vld [vmem:[#allocation2 + $0x30] sm:$0xff] }
 0x133   : > { %v1052_v33 = vpop.f32.mrf.mxu0  ;;  %v1076_v34 = vpop.f32.mrf.mxu1 }
 0x135   : > { %v1053_v36 = vpop.f32.mrf.mxu0  ;;  %v1077_v38 = vpop.f32.mrf.mxu1 }
 0x136   : > { %v1054_v39 = vadd.f32 %v1053_v36, %v1052_v33  ;;  %v1078_v40 = vadd.f32 %v1077_v38, %v1076_v34  ;;  %v312_v33 = vld [vmem:[#allocation2 + $0x70] sm:$0xff] }
 0x137   : > { %v1055_v41 = vpop.f32.mrf.mxu0  ;;  %v1079_v42 = vpop.f32.mrf.mxu1 }
 0x138   : > { %v635_v43 = vadd.f32 %v1054_v39, %v298_v35  ;;  %v643_v44 = vadd.f32 %v1078_v40, %v306_v37 }
 0x139   : > { %v1056_v46 = vpop.f32.mrf.mxu0  ;;  %v1080_v48 = vpop.f32.mrf.mxu1 }
 0x13a   : > { %652 = vst.msk [vmem:[#allocation2] sm:$0xff] %vm651_vm1, %v635_v43  ;;  %660 = vst.msk [vmem:[#allocation2 + $0x40] sm:$0xff] %vm651_vm1, %v643_v44  ;;  %v1057_v49 = vadd.f32 %v1056_v46, %v1055_v41  ;;  %v1081_v50 = vadd.f32 %v1080_v48, %v1079_v42  ;;  %v305_v41 = vld [vmem:[#allocation2 + $0x38] sm:$0xff] }
 0x13b   : > { %v1058_v51 = vpop.f32.mrf.mxu0  ;;  %v1082_v52 = vpop.f32.mrf.mxu1  ;;  %v313_v43 = vld [vmem:[#allocation2 + $0x78] sm:$0xff] }
 0x13c   : > { %v636_v53 = vadd.f32 %v1057_v49, %v299_v45  ;;  %v644_v54 = vadd.f32 %v1081_v50, %v307_v47 }
 0x13d   : > { %v1059_v56 = vpop.f32.mrf.mxu0  ;;  %v1083_v58 = vpop.f32.mrf.mxu1 }
 0x13e   : > { %653 = vst.msk [vmem:[#allocation2 + $0x8] sm:$0xff] %vm651_vm1, %v636_v53  ;;  %661 = vst.msk [vmem:[#allocation2 + $0x48] sm:$0xff] %vm651_vm1, %v644_v54  ;;  %v1060_v59 = vadd.f32 %v1059_v56, %v1058_v51  ;;  %v1084_v60 = vadd.f32 %v1083_v58, %v1082_v52 }
 0x13f   : > { %v1061_v61 = vpop.f32.mrf.mxu0  ;;  %v1085_v62 = vpop.f32.mrf.mxu1 }
 0x140   : > { %v637_v63 = vadd.f32 %v1060_v59, %v300_v55  ;;  %v645_v0 = vadd.f32 %v1084_v60, %v308_v57 }
 0x141   : > { %v1062_v2 = vpop.f32.mrf.mxu0  ;;  %v1086_v4 = vpop.f32.mrf.mxu1 }
 0x142   : > { %654 = vst.msk [vmem:[#allocation2 + $0x10] sm:$0xff] %vm651_vm1, %v637_v63  ;;  %662 = vst.msk [vmem:[#allocation2 + $0x50] sm:$0xff] %vm651_vm1, %v645_v0  ;;  %v1063_v5 = vadd.f32 %v1062_v2, %v1061_v61  ;;  %v1087_v6 = vadd.f32 %v1086_v4, %v1085_v62 }
 0x143   : > { %v1064_v7 = vpop.f32.mrf.mxu0  ;;  %v1088_v8 = vpop.f32.mrf.mxu1 }
 0x144   : > { %v638_v9 = vadd.f32 %v1063_v5, %v301_v1  ;;  %v646_v10 = vadd.f32 %v1087_v6, %v309_v3 }
 0x145   : > { %v1065_v12 = vpop.f32.mrf.mxu0  ;;  %v1089_v14 = vpop.f32.mrf.mxu1 }
 0x146   : > { %655 = vst.msk [vmem:[#allocation2 + $0x18] sm:$0xff] %vm651_vm1, %v638_v9  ;;  %663 = vst.msk [vmem:[#allocation2 + $0x58] sm:$0xff] %vm651_vm1, %v646_v10  ;;  %v1066_v15 = vadd.f32 %v1065_v12, %v1064_v7  ;;  %v1090_v16 = vadd.f32 %v1089_v14, %v1088_v8 }
 0x147   : > { %v1067_v17 = vpop.f32.mrf.mxu0  ;;  %v1091_v18 = vpop.f32.mrf.mxu1 }
 0x148   : > { %v639_v19 = vadd.f32 %v1066_v15, %v302_v11  ;;  %v647_v20 = vadd.f32 %v1090_v16, %v310_v13 }
 0x149   : > { %v1068_v22 = vpop.f32.mrf.mxu0  ;;  %v1092_v24 = vpop.f32.mrf.mxu1 }
 0x14a   : > { %656 = vst.msk [vmem:[#allocation2 + $0x20] sm:$0xff] %vm651_vm1, %v639_v19  ;;  %664 = vst.msk [vmem:[#allocation2 + $0x60] sm:$0xff] %vm651_vm1, %v647_v20  ;;  %v1069_v25 = vadd.f32 %v1068_v22, %v1067_v17  ;;  %v1093_v26 = vadd.f32 %v1092_v24, %v1091_v18 }
 0x14b   : > { %v1070_v27 = vpop.f32.mrf.mxu0  ;;  %v1094_v28 = vpop.f32.mrf.mxu1 }
 0x14c   : > { %v640_v29 = vadd.f32 %v1069_v25, %v303_v21  ;;  %v648_v30 = vadd.f32 %v1093_v26, %v311_v23 }
 0x14d   : > { %v1071_v32 = vpop.f32.mrf.mxu0  ;;  %v1095_v34 = vpop.f32.mrf.mxu1 }
 0x14e   : > { %657 = vst.msk [vmem:[#allocation2 + $0x28] sm:$0xff] %vm651_vm1, %v640_v29  ;;  %665 = vst.msk [vmem:[#allocation2 + $0x68] sm:$0xff] %vm651_vm1, %v648_v30  ;;  %v1072_v35 = vadd.f32 %v1071_v32, %v1070_v27  ;;  %v1096_v36 = vadd.f32 %v1095_v34, %v1094_v28 }
 0x14f   : > { %v1073_v37 = vpop.f32.mrf.mxu0  ;;  %v1097_v38 = vpop.f32.mrf.mxu1 }
 0x150   : > { %v641_v39 = vadd.f32 %v1072_v35, %v304_v31  ;;  %v649_v40 = vadd.f32 %v1096_v36, %v312_v33 }
 0x151   : > { %v1074_v42 = vpop.f32.mrf.mxu0  ;;  %v1098_v44 = vpop.f32.mrf.mxu1 }
 0x152   : > { %658 = vst.msk [vmem:[#allocation2 + $0x30] sm:$0xff] %vm651_vm1, %v641_v39  ;;  %666 = vst.msk [vmem:[#allocation2 + $0x70] sm:$0xff] %vm651_vm1, %v649_v40  ;;  %v1075_v45 = vadd.f32 %v1074_v42, %v1073_v37  ;;  %v1099_v46 = vadd.f32 %v1098_v44, %v1097_v38  ;;  %671 = sbr.rel (%p1029_p8) target bundleno = 390 (0x186), region = 40 }
 0x154   : > { %v642_v47 = vadd.f32 %v1075_v45, %v305_v41  ;;  %v650_v48 = vadd.f32 %v1099_v46, %v313_v43 }
 0x156   : > { %659 = vst.msk [vmem:[#allocation2 + $0x38] sm:$0xff] %vm651_vm1, %v642_v47  ;;  %667 = vst.msk [vmem:[#allocation2 + $0x78] sm:$0xff] %vm651_vm1, %v650_v48 }
 0x157   : > { %v672_v49 = vld [vmem:[#allocation2] sm:$0xff]  ;;  %v673_v50 = vld [vmem:[#allocation2 + $0x8] sm:$0xff]  ;;  %v674_v51 = vld [vmem:[#allocation2 + $0x10] sm:$0xff]  ;;  %vm741_vm2 = vcmask 516096  }
 0x158   : > { %688 = vst.msk [vmem:[%s1619_s4] sm:$0xff] %vm651_vm1, %v672_v49  ;;  %v704_v52 = vsel %vm651_vm1, %v672_v49, 0.0  ;;  %v743_v53 = vmul.f32 %v672_v49, %v672_v49  ;;  %689 = vst.msk [vmem:[%s1619_s4 + $0x8] sm:$0xff] %vm651_vm1, %v673_v50  ;;  %v705_v54 = vsel %vm651_vm1, %v673_v50, 0.0  ;;  %v744_v55 = vmul.f32 %v673_v50, %v673_v50  ;;  %v675_v56 = vld [vmem:[#allocation2 + $0x18] sm:$0xff]  ;;  %v676_v57 = vld [vmem:[#allocation2 + $0x20] sm:$0xff] }
 0x159   : > { %690 = vst.msk [vmem:[%s1619_s4 + $0x10] sm:$0xff] %vm651_vm1, %v674_v51  ;;  %v677_v58 = vld [vmem:[#allocation2 + $0x28] sm:$0xff]  ;;  %v706_v59 = vadd.f32 %v705_v54, %v704_v52  ;;  %v707_v60 = vsel %vm651_vm1, %v674_v51, 0.0  ;;  %v745_v61 = vmul.f32 %v674_v51, %v674_v51  ;;  %691 = vst.msk [vmem:[%s1619_s4 + $0x18] sm:$0xff] %vm651_vm1, %v675_v56  ;;  %v678_v62 = vld [vmem:[#allocation2 + $0x30] sm:$0xff]  ;;  %v709_v3 = vsel %vm651_vm1, %v675_v56, 0.0 }
 0x15a   : > { %692 = vst.msk [vmem:[%s1619_s4 + $0x20] sm:$0xff] %vm651_vm1, %v676_v57  ;;  %693 = vst.msk [vmem:[%s1619_s4 + $0x28] sm:$0xff] %vm651_vm1, %v677_v58  ;;  %v680_v0 = vld [vmem:[#allocation2 + $0x40] sm:$0xff]  ;;  %v759_v1 = vsel %vm651_vm1, %v743_v53, 0.0  ;;  %v760_v2 = vsel %vm651_vm1, %v744_v55, 0.0  ;;  %v746_v4 = vmul.f32 %v675_v56, %v675_v56  ;;  %v681_v5 = vld [vmem:[#allocation2 + $0x48] sm:$0xff]  ;;  %v747_v11 = vmul.f32 %v676_v57, %v676_v57 }
 0x15b   : > { %694 = vst.msk [vmem:[%s1619_s4 + $0x30] sm:$0xff] %vm651_vm1, %v678_v62  ;;  %696 = vst.msk [vmem:[%s1619_s4 + $0x40] sm:$0xff] %vm651_vm1, %v680_v0  ;;  %v682_v6 = vld [vmem:[#allocation2 + $0x50] sm:$0xff]  ;;  %v683_v7 = vld [vmem:[#allocation2 + $0x58] sm:$0xff]  ;;  %v761_v8 = vadd.f32 %v760_v2, %v759_v1  ;;  %v708_v9 = vadd.f32 %v707_v60, %v706_v59  ;;  %v762_v10 = vsel %vm651_vm1, %v745_v61, 0.0  ;;  %v711_v16 = vsel %vm651_vm1, %v676_v57, 0.0 }
 0x15c   : > { %697 = vst.msk [vmem:[%s1619_s4 + $0x48] sm:$0xff] %vm651_vm1, %v681_v5  ;;  %698 = vst.msk [vmem:[%s1619_s4 + $0x50] sm:$0xff] %vm651_vm1, %v682_v6  ;;  %v684_v12 = vld [vmem:[#allocation2 + $0x60] sm:$0xff]  ;;  %v685_v13 = vld [vmem:[#allocation2 + $0x68] sm:$0xff]  ;;  %v764_v15 = vsel %vm651_vm1, %v746_v4, 0.0  ;;  %v748_v17 = vmul.f32 %v677_v58, %v677_v58  ;;  %v766_v21 = vsel %vm651_vm1, %v747_v11, 0.0  ;;  %v749_v23 = vmul.f32 %v678_v62, %v678_v62 }
 0x15d   : > { %v679_v63 = vld [vmem:[#allocation2 + $0x38] sm:$0xff]  ;;  %699 = vst.msk [vmem:[%s1619_s4 + $0x58] sm:$0xff] %vm651_vm1, %v683_v7  ;;  %v686_v14 = vld [vmem:[#allocation2 + $0x70] sm:$0xff]  ;;  %700 = vst.msk [vmem:[%s1619_s4 + $0x60] sm:$0xff] %vm651_vm1, %v684_v12  ;;  %v763_v19 = vadd.f32 %v762_v10, %v761_v8  ;;  %v710_v20 = vadd.f32 %v709_v3, %v708_v9  ;;  %v713_v22 = vsel %vm651_vm1, %v677_v58, 0.0  ;;  %v715_v27 = vsel %vm651_vm1, %v678_v62, 0.0 }
 0x15e   : > { %695 = vst.msk [vmem:[%s1619_s4 + $0x38] sm:$0xff] %vm651_vm1, %v679_v63  ;;  %701 = vst.msk [vmem:[%s1619_s4 + $0x68] sm:$0xff] %vm651_vm1, %v685_v13  ;;  %v687_v18 = vld [vmem:[#allocation2 + $0x78] sm:$0xff]  ;;  %v768_v26 = vsel %vm651_vm1, %v748_v17, 0.0  ;;  %v750_v28 = vmul.f32 %v679_v63, %v679_v63  ;;  %v770_v31 = vsel %vm651_vm1, %v749_v23, 0.0  ;;  %v717_v32 = vsel %vm651_vm1, %v679_v63, 0.0 }
 0x15f   : > { %702 = vst.msk [vmem:[%s1619_s4 + $0x70] sm:$0xff] %vm651_vm1, %v686_v14  ;;  %703 = vst.msk [vmem:[%s1619_s4 + $0x78] sm:$0xff] %vm651_vm1, %v687_v18  ;;  %v765_v24 = vadd.f32 %v764_v15, %v763_v19  ;;  %v712_v25 = vadd.f32 %v711_v16, %v710_v20  ;;  %v751_v33 = vmul.f32 %v680_v0, %v680_v0  ;;  %v719_v37 = vsel %vm651_vm1, %v680_v0, 0.0 }
 0x160   : > { %v772_v36 = vsel %vm651_vm1, %v750_v28, 0.0  ;;  %v752_v38 = vmul.f32 %v681_v5, %v681_v5  ;;  %v721_v42 = vsel %vm651_vm1, %v681_v5, 0.0  ;;  %v753_v43 = vmul.f32 %v682_v6, %v682_v6 }
 0x161   : > { %v767_v29 = vadd.f32 %v766_v21, %v765_v24  ;;  %v714_v30 = vadd.f32 %v713_v22, %v712_v25  ;;  %v774_v41 = vsel %vm651_vm1, %v751_v33, 0.0  ;;  %v723_v47 = vsel %vm651_vm1, %v682_v6, 0.0 }
 0x162   : > { %v776_v46 = vsel %vm651_vm1, %v752_v38, 0.0  ;;  %v754_v48 = vmul.f32 %v683_v7, %v683_v7  ;;  %v778_v51 = vsel %vm651_vm1, %v753_v43, 0.0  ;;  %v725_v52 = vsel %vm651_vm1, %v683_v7, 0.0 }
 0x163   : > { %v769_v34 = vadd.f32 %v768_v26, %v767_v29  ;;  %v716_v35 = vadd.f32 %v715_v27, %v714_v30  ;;  %v755_v53 = vmul.f32 %v684_v12, %v684_v12  ;;  %v727_v57 = vsel %vm651_vm1, %v684_v12, 0.0 }
 0x164   : > { %v780_v56 = vsel %vm651_vm1, %v754_v48, 0.0  ;;  %v756_v58 = vmul.f32 %v685_v13, %v685_v13  ;;  %v729_v62 = vsel %vm651_vm1, %v685_v13, 0.0  ;;  %v757_v63 = vmul.f32 %v686_v14, %v686_v14 }
 0x165   : > { %v771_v39 = vadd.f32 %v770_v31, %v769_v34  ;;  %v718_v40 = vadd.f32 %v717_v32, %v716_v35  ;;  %v782_v61 = vsel %vm651_vm1, %v755_v53, 0.0  ;;  %v731_v3 = vsel %vm651_vm1, %v686_v14, 0.0 }
 0x166   : > { %v784_v2 = vsel %vm651_vm1, %v756_v58, 0.0  ;;  %v758_v4 = vmul.f32 %v687_v18, %v687_v18  ;;  %v786_v7 = vsel %vm651_vm1, %v757_v63, 0.0  ;;  %v733_v8 = vsel %vm651_vm1, %v687_v18, 0.0 }
 0x167   : > { %v773_v44 = vadd.f32 %v772_v36, %v771_v39  ;;  %v720_v45 = vadd.f32 %v719_v37, %v718_v40 }
 0x168   : > { %v788_v11 = vsel %vm651_vm1, %v758_v4, 0.0 }
 0x169   : > { %v775_v49 = vadd.f32 %v774_v41, %v773_v44  ;;  %v722_v50 = vadd.f32 %v721_v42, %v720_v45 }
 0x16b   : > { %v777_v54 = vadd.f32 %v776_v46, %v775_v49  ;;  %v724_v55 = vadd.f32 %v723_v47, %v722_v50 }
 0x16d   : > { %v779_v59 = vadd.f32 %v778_v51, %v777_v54  ;;  %v726_v60 = vadd.f32 %v725_v52, %v724_v55 }
 0x16f   : > { %v781_v0 = vadd.f32 %v780_v56, %v779_v59  ;;  %v728_v1 = vadd.f32 %v727_v57, %v726_v60 }
 0x171   : > { %v783_v5 = vadd.f32 %v782_v61, %v781_v0  ;;  %v730_v6 = vadd.f32 %v729_v62, %v728_v1 }
 0x173   : > { %v785_v9 = vadd.f32 %v784_v2, %v783_v5  ;;  %v732_v10 = vadd.f32 %v731_v3, %v730_v6 }
 0x175   : > { %v787_v12 = vadd.f32 %v786_v7, %v785_v9  ;;  %v734_v13 = vadd.f32 %v733_v8, %v732_v10 }
 0x177   : > { %v735_v15 = vrot.slane %v734_v13, 4  ;;  %v789_v16 = vadd.f32 %v788_v11, %v787_v12 }
 0x179   : > { %v736_v17 = vadd.f32 %v735_v15, %v734_v13  ;;  %v790_v19 = vrot.slane %v789_v16, 4 }
 0x17b   : > { %v737_v14 = vrot.slane %v736_v17, 2  ;;  %v791_v20 = vadd.f32 %v790_v19, %v789_v16 }
 0x17d   : > { %v738_v21 = vadd.f32 %v737_v14, %v736_v17  ;;  %v792_v22 = vrot.slane %v791_v20, 2 }
 0x17f   : > { %v739_v23 = vrot.slane %v738_v21, 1  ;;  %v793_v24 = vadd.f32 %v792_v22, %v791_v20 }
 0x181   : > { %v740_v18 = vadd.f32 %v739_v23, %v738_v21  ;;  %v794_v25 = vrot.slane %v793_v24, 1 }
 0x183   : > { %742 = vst.msk [vmem:[%s257_s18] sm:$0x1] %vm741_vm2, %v740_v18  ;;  %v795_v26 = vadd.f32 %v794_v25, %v793_v24 }
 0x185   : > { %796 = vst.msk [vmem:[%s263_s9] sm:$0x1] %vm741_vm2, %v795_v26 }
 0x186 PF: > { %s1761_s10 = scalar_lea.hbm %s1847_s3, %s1607_s13  ;;  %s823_s24 = sshll.u32 %s257_s18, 4  ;;  %s824_s24 = int_to_ptr.vmem [resolvable:$true] %s823_s24 }
 0x187   : > { %s1864_s27 = sld [smem:[#allocation17_spill]]  ;;  %s803_s8 = scalar_lea.sflag [#allocation5], %s1602_s29 }
 0x188   : > { %s1294_s26 = scalar_lea.vmem %s824_s24, 16  ;;  %s1450_s5 = smov [#allocation6]  }
 0x189   : > { %p1295_p9 = scmp.ne.s32.totalorder %s824_s24, %s1294_s26  ;;  %s1298_s28 = sshll.u32 %s1450_s5, 4  ;;  %s1299_s28 = int_to_ptr.vmem [resolvable:$false] %s1298_s28 }
 0x18a   : > { %s1300_s6 = scalar_lea.vmem %s1299_s28, 32  ;;  %p1301_p11 = scmp.lt.s32.totalorder %s824_s24, %s1299_s28 }
 0x18b   : > { %p1296_p3 = pnand %p1295_p9, %p1559_p12  ;;  %p1302_p13 = scmp.lt.s32.totalorder %s1300_s6, %s1294_s26 }
 0x18d   : > { %s1769_s7 = scalar_lea.hbm %s1864_s27, %s1607_s13  ;;  %p1297_p10 = pneg %p1296_p3 }
 0x18e   : > { %p1303_p0 = por %p1302_p13, %p1301_p11 }
 0x190   : > { %p1304_p1 = pnand %p1303_p0, %p1297_p10 }
 0x192   : > { %1307 = shalt.err (!%p1304_p1)
}
 0x193   : > { %s1308_s13 = scalar_lea.hbm %s1761_s10, 16  ;;  %s1312_s21 = scalar_lea.hbm %s1847_s3, 64 }
 0x194   : > { %p1309_p5 = scmp.ne.s32.totalorder %s1761_s10, %s1308_s13  ;;  %p1313_p7 = scmp.lt.s32.totalorder %s1761_s10, %s1847_s3 }
 0x195   : > { %p1314_p8 = scmp.lt.s32.totalorder %s1312_s21, %s1308_s13 }
 0x196   : > { %p1310_p4 = pnand %p1309_p5, %p1559_p12 }
 0x197   : > { %p1315_p9 = por %p1314_p8, %p1313_p7 }
 0x198   : > { %p1311_p6 = pneg %p1310_p4 }
 0x19a   : > { %p1316_p3 = pnand %p1315_p9, %p1311_p6 }
 0x19c   : > { %1319 = shalt.err (!%p1316_p3)
}
 0x19d   : > { %1118 = dma.vmem_to_hbm [thread:$0]  (%p1559_p12), %s824_s24, 16, %s1761_s10, %s803_s8  }
 0x19e   : > { %s836_s30 = sshll.u32 %s263_s9, 4  ;;  %s807_s26 = scalar_lea.sflag [#allocation8], %s1602_s29  ;;  %s837_s30 = int_to_ptr.vmem [resolvable:$true] %s836_s30 }
 0x19f   : > { %s1320_s5 = scalar_lea.vmem %s837_s30, 16  ;;  %s1451_s28 = smov [#allocation7]  }
 0x1a0   : > { %p1321_p10 = scmp.ne.s32.totalorder %s837_s30, %s1320_s5  ;;  %s1324_s6 = sshll.u32 %s1451_s28, 4  ;;  %s1325_s6 = int_to_ptr.vmem [resolvable:$false] %s1324_s6 }
 0x1a1   : > { %s1326_s13 = scalar_lea.vmem %s1325_s6, 32  ;;  %p1327_p0 = scmp.lt.s32.totalorder %s837_s30, %s1325_s6 }
 0x1a2   : > { %p1322_p11 = pnand %p1321_p10, %p1559_p12  ;;  %p1328_p1 = scmp.lt.s32.totalorder %s1326_s13, %s1320_s5 }
 0x1a4   : > { %p1323_p13 = pneg %p1322_p11  ;;  %p1329_p5 = por %p1328_p1, %p1327_p0 }
 0x1a6   : > { %p1330_p4 = pnand %p1329_p5, %p1323_p13 }
 0x1a8   : > { %1333 = shalt.err (!%p1330_p4)
}
 0x1a9   : > { %s1334_s9 = scalar_lea.hbm %s1769_s7, 16  ;;  %s1338_s24 = scalar_lea.hbm %s1864_s27, 64 }
 0x1aa   : > { %p1335_p6 = scmp.ne.s32.totalorder %s1769_s7, %s1334_s9  ;;  %p1339_p9 = scmp.lt.s32.totalorder %s1769_s7, %s1864_s27 }
 0x1ab   : > { %p1340_p3 = scmp.lt.s32.totalorder %s1338_s24, %s1334_s9 }
 0x1ac   : > { %p1336_p7 = pnand %p1335_p6, %p1559_p12 }
 0x1ad   : > { %p1341_p10 = por %p1340_p3, %p1339_p9 }
 0x1ae   : > { %p1337_p8 = pneg %p1336_p7 }
 0x1b0   : > { %p1342_p11 = pnand %p1341_p10, %p1337_p8 }
 0x1b2   : > { %1345 = shalt.err (!%p1342_p11)
}
 0x1b3   : > { %1119 = dma.vmem_to_hbm [thread:$0]  (%p1559_p12), %s837_s30, 16, %s1769_s7, %s807_s26  }
 0x1b4 PF: > { %p1134_p13 = scmp.ge.s32.totalorder %s1444_s25, 2  ;;  %s856_s18 = sand.u32 1, %s1404_s15  }
 0x1b5   : > { %s857_s21 = scalar_lea.sflag [#allocation5], %s856_s18 }
 0x1b6   : > { %p1127_p0 = pnand %p1134_p13, %p1572_p2 }
 0x1b8   : > { %p1128_p1 = pneg %p1127_p0 }
 0x1ba   : > { %1395 = dma.done.wait (%p1128_p1), %s857_s21, 16  }
 0x1bb   : > { %1397 = vsyncadd (%p1128_p1), %s857_s21, 4294967280  ;;  %s865_s22 = scalar_lea.sflag [#allocation8], %s856_s18 }
 0x1bc   : > { %1399 = dma.done.wait (%p1128_p1), %s865_s22, 16  }
 0x1bd   : > { %1401 = vsyncadd (%p1128_p1), %s865_s22, 4294967280  ;;  %s24_s25 = sadd.s32 1, %s1444_s25   ;;  %s1865_s11 = sld [smem:[#allocation15_spill]] }
 0x1be   : > { %p21_p5 = scmp.ge.s32.totalorder %s24_s25, 18   ;;  %s1866_s7 = sld [smem:[#allocation16_spill]] }
 0x1bf   : > { %s1867_s22 = sld [smem:[#allocation12_spill]]  ;;  %s1870_s15 = smov %s1408_s16 }
 0x1c0   : > { %s1868_s14 = sld [smem:[#allocation13_spill]]  ;;  %s1871_s16 = smov %s1412_s17 }
 0x1c1   : > { %s1869_s24 = sld [smem:[#allocation14_spill]]  ;;  %s1873_s18 = smov %s1420_s19 }
 0x1c2   : > { %s1874_s19 = smov %s1424_s20  ;;  %s1876_s21 = smov %s1436_s23 }
 0x1c3   : > { %s1872_s17 = smov %s1865_s11  ;;  %23 = sbr.rel (!%p21_p5) target bundleno = 13 (0xd), region = 113 }
 0x1c4   : > { %s1875_s20 = smov %s1866_s7 }
 0x1c6   : > { %s1877_s23 = smov %s1868_s14 }
 0x1c8   :  { %869 = vsyncpa [#allocation4], 1 }
 0x1c9   :  { %871 = vsyncpa [#allocation4 + $0x1], 1 }
 0x1ca   :  { %872 = vsyncpa [#allocation5], 1 }
 0x1cb   :  { %874 = vsyncpa [#allocation5 + $0x1], 1 }
 0x1cc   :  { %875 = vsyncpa [#allocation8], 1 }
 0x1cd   :  { %877 = vsyncpa [#allocation8 + $0x1], 1 }

</bundles_post_ra>
